<compile_context>
chip_gen: v7x
topology: tpu7x:2x2x1
jax: 0.10.0
libtpu: 0.0.40
codegen_flags: <defaults>
</compile_context>

<pallas_src>
import jax
import jax.numpy as jnp
from jax.experimental import pallas as pl
from jax.experimental.pallas import tpu as pltpu

HIDDEN = 64
LANE = 128
MAX_TILE_B = 2048  # sweep 512-4096 if tuning; intermediates ~0.5 MiB at 2048


def ddpm_mlp_kernel(xT_ref, sp_ref, w2_ref, w3m_ref, oT_ref):
    # xT_ref : (1, TB)    batch on lanes
    # sp_ref : (64, 8)    packed small params: col0=w1, col1=b1, col2=b2, col3=b3
    # w2_ref : (64, 64)   layer2 weight (used as W2 @ h1)
    # w3m_ref: (8, 64)    row 0 = output_layer.weight, rows 1..7 zero
    # oT_ref : (1, TB)
    xT = xT_ref[...]
    sp = sp_ref[...]
    w1 = sp[:, 0:1]        # (64, 1)
    b1 = sp[:, 1:2]        # (64, 1)
    b2 = sp[:, 2:3]        # (64, 1)
    b3 = sp[0:1, 3:4]      # (1, 1)

    # layer1 (fan_in=1): pure VPU broadcast FMA + ReLU -> (64, TB)
    h1 = jnp.maximum(w1 * xT + b1, 0.0)

    # layer2: MXU matmul + bias + ReLU -> (64, TB)
    h2 = jnp.dot(w2_ref[...], h1, preferred_element_type=jnp.float32) + b2
    h2 = jnp.maximum(h2, 0.0)

    # output layer: 64-feature reduction done on the MXU; keep row 0 only.
    o8 = jnp.dot(w3m_ref[...], h2, preferred_element_type=jnp.float32)  # (8, TB)
    oT_ref[...] = (o8[0:1, :] + b3).astype(oT_ref.dtype)                # lane-dense store


def _round_up(n, m):
    return -(-n // m) * m


def _choose_tile_b(batch, max_tile=MAX_TILE_B):
    bp = _round_up(batch, LANE)
    if bp <= LANE:
        return LANE
    if bp <= max_tile:
        # split into (at least) two grid steps so both v7x TensorCores get work;
        # costs only one extra ~0.35us step on single-core v5e/v6e.
        return max(_round_up(bp // 2, LANE), LANE)
    return max_tile


def pack_params(params):
    """PyTorch-layout params -> kernel layout (sp, w2, w3m)."""
    w1, b1, w2, b2, w3, b3 = params
    sp = jnp.zeros((HIDDEN, 8), jnp.float32)
    sp = sp.at[:, 0].set(w1[:, 0])                              # layer1.weight
    sp = sp.at[:, 1].set(b1)                                    # layer1.bias
    sp = sp.at[:, 2].set(b2)                                    # layer2.bias
    sp = sp.at[:, 3].set(jnp.broadcast_to(b3, (HIDDEN,)))       # output_layer.bias
    w3m = jnp.zeros((8, HIDDEN), jnp.float32).at[0, :].set(w3[0, :])
    return sp, w2.astype(jnp.float32), w3m


def ddpm_forward(x, params, *, tile_b=None):
    """x: (B, 1) float32 -> (B, 1) float32, same semantics as DDPM.forward."""
    sp, w2, w3m = pack_params(params)
    B = x.shape[0]
    if tile_b is None:
        tile_b = _choose_tile_b(B)
    n_tiles = pl.cdiv(B, tile_b)
    Bp = n_tiles * tile_b

    # batch on lanes; zero-pad the last tile (padded outputs are sliced away).
    # TODO(synk): if this runs inside a diffusion timestep loop, keep the (1, B)
    #             layout across calls and drop the transpose/pad/slice here.
    xT = jnp.pad(x.reshape(B, 1).T, ((0, 0), (0, Bp - B)))

    weight_bytes = 4 * (sp.size + w2.size + w3m.size)
    cost = pl.CostEstimate(
        flops=Bp * (2 * HIDDEN + 2 * HIDDEN * HIDDEN + 2 * 8 * HIDDEN),
        transcendentals=0,
        bytes_accessed=8 * Bp + weight_bytes,
    )

    resident = lambda a: pl.BlockSpec(a.shape, lambda i: (0, 0))

    oT = pl.pallas_call(
        ddpm_mlp_kernel,
        out_shape=jax.ShapeDtypeStruct((1, Bp), jnp.float32),
        grid=(n_tiles,),
        in_specs=[
            pl.BlockSpec((1, tile_b), lambda i: (0, i)),   # x tile, batch on lanes
            resident(sp),
            resident(w2),
            resident(w3m),
        ],
        out_specs=pl.BlockSpec((1, tile_b), lambda i: (0, i)),
        compiler_params=pltpu.CompilerParams(
            dimension_semantics=("parallel",),
        ),
        cost_estimate=cost,
    )(xT, sp, w2, w3m)

    return oT[:, :B].T                                     # (B, 1)


def init_params(key):
    # PyTorch nn.Linear default init: U(-1/sqrt(fan_in), 1/sqrt(fan_in)),
    # stored in PyTorch layouts (weight: (out, in), bias: (out,)).
    ks = jax.random.split(key, 6)

    def uniform(k, shape, fan_in):
        bound = 1.0 / (fan_in ** 0.5)
        return jax.random.uniform(k, shape, jnp.float32, -bound, bound)

    w1 = uniform(ks[0], (HIDDEN, 1), 1)            # layer1.weight
    b1 = uniform(ks[1], (HIDDEN,), 1)              # layer1.bias
    w2 = uniform(ks[2], (HIDDEN, HIDDEN), HIDDEN)  # layer2.weight
    b2 = uniform(ks[3], (HIDDEN,), HIDDEN)         # layer2.bias
    w3 = uniform(ks[4], (1, HIDDEN), HIDDEN)       # output_layer.weight
    b3 = uniform(ks[5], (1,), HIDDEN)              # output_layer.bias
    return (w1, b1, w2, b2, w3, b3)


if __name__ == "__main__":
    key = jax.random.PRNGKey(0)
    pkey, xkey = jax.random.split(key)
    params = init_params(pkey)

    # B=200 is intentionally NOT a multiple of 128 so the padded, multi-tile
    # (2 x 128-lane) grid path is exercised.
    B = 200
    x = jax.random.normal(xkey, (B, 1), jnp.float32)

    out = jax.block_until_ready(ddpm_forward(x, params))

    # Pure-JAX reference in standard (B, features) layout / PyTorch param layout.
    w1, b1, w2, b2, w3, b3 = params
    ref = jnp.maximum(x @ w1.T + b1, 0.0)      # (B, 64)
    ref = jnp.maximum(ref @ w2.T + b2, 0.0)    # (B, 64)
    ref = ref @ w3.T + b3                      # (B, 1)

    assert out.shape == (B, 1)
    assert jnp.allclose(out, ref, atol=1e-5, rtol=1e-5), float(jnp.max(jnp.abs(out - ref)))

    print("KERNEL_OK")
</pallas_src>

<mosaic_0001>
module attributes {stable_mosaic.version = 11 : i64} {
  func.func @ddpm_mlp_kernel(%arg0: i32, %arg1: memref<1x128xf32, #tpu.memory_space<vmem>>, %arg2: memref<64x8xf32, #tpu.memory_space<vmem>>, %arg3: memref<64x64xf32, #tpu.memory_space<vmem>>, %arg4: memref<8x64xf32, #tpu.memory_space<vmem>>, %arg5: memref<1x128xf32, #tpu.memory_space<vmem>>) attributes {dimension_semantics = [#tpu.dimension_semantics<parallel>], iteration_bounds = array<i64: 2>, scalar_prefetch = 0 : i64, scratch_operands = 0 : i64, tpu.core_type = #tpu.core_type<tc>, window_params = [{transform_indices = @transform_0, window_bounds = array<i64: 1, 128>}, {pipeline_mode = #tpu.pipeline_mode<synchronous>, transform_indices = @transform_1, window_bounds = array<i64: 64, 8>}, {pipeline_mode = #tpu.pipeline_mode<synchronous>, transform_indices = @transform_2, window_bounds = array<i64: 64, 64>}, {pipeline_mode = #tpu.pipeline_mode<synchronous>, transform_indices = @transform_3, window_bounds = array<i64: 8, 64>}, {transform_indices = @transform_4, window_bounds = array<i64: 1, 128>}]} {
    %c0 = arith.constant 0 : index
    %c0_0 = arith.constant 0 : index
    %0 = vector.load %arg1[%c0, %c0_0] : memref<1x128xf32, #tpu.memory_space<vmem>>, vector<1x128xf32>
    %c0_1 = arith.constant 0 : index
    %c0_2 = arith.constant 0 : index
    %1 = vector.load %arg2[%c0_1, %c0_2] : memref<64x8xf32, #tpu.memory_space<vmem>>, vector<64x8xf32>
    %2 = vector.extract_strided_slice %1 {offsets = [0, 0], sizes = [64, 1], strides = [1, 1]} : vector<64x8xf32> to vector<64x1xf32>
    %3 = vector.extract_strided_slice %1 {offsets = [0, 1], sizes = [64, 1], strides = [1, 1]} : vector<64x8xf32> to vector<64x1xf32>
    %4 = vector.extract_strided_slice %1 {offsets = [0, 2], sizes = [64, 1], strides = [1, 1]} : vector<64x8xf32> to vector<64x1xf32>
    %5 = vector.extract_strided_slice %1 {offsets = [0, 3], sizes = [1, 1], strides = [1, 1]} : vector<64x8xf32> to vector<1x1xf32>
    %6 = vector.broadcast %2 : vector<64x1xf32> to vector<64x128xf32>
    %7 = vector.broadcast %0 : vector<1x128xf32> to vector<64x128xf32>
    %8 = arith.mulf %6, %7 : vector<64x128xf32>
    %9 = vector.broadcast %3 : vector<64x1xf32> to vector<64x128xf32>
    %10 = arith.addf %8, %9 : vector<64x128xf32>
    %cst = arith.constant 0.000000e+00 : f32
    %11 = vector.broadcast %cst : f32 to vector<64x128xf32>
    %12 = arith.maximumf %10, %11 : vector<64x128xf32>
    %c0_3 = arith.constant 0 : index
    %c0_4 = arith.constant 0 : index
    %13 = vector.load %arg3[%c0_3, %c0_4] : memref<64x64xf32, #tpu.memory_space<vmem>>, vector<64x64xf32>
    %cst_5 = arith.constant dense<0.000000e+00> : vector<64x128xf32>
    %14 = tpu.matmul %13, %12, %cst_5 {dimension_numbers = #tpu.dot_dimension_numbers<[1], [0], [0], [1], [0, 0, 1, 1], [], []>} : vector<64x64xf32>, vector<64x128xf32>, vector<64x128xf32> -> vector<64x128xf32>
    %15 = vector.broadcast %4 : vector<64x1xf32> to vector<64x128xf32>
    %16 = arith.addf %14, %15 : vector<64x128xf32>
    %cst_6 = arith.constant 0.000000e+00 : f32
    %17 = vector.broadcast %cst_6 : f32 to vector<64x128xf32>
    %18 = arith.maximumf %16, %17 : vector<64x128xf32>
    %c0_7 = arith.constant 0 : index
    %c0_8 = arith.constant 0 : index
    %19 = vector.load %arg4[%c0_7, %c0_8] : memref<8x64xf32, #tpu.memory_space<vmem>>, vector<8x64xf32>
    %cst_9 = arith.constant dense<0.000000e+00> : vector<8x128xf32>
    %20 = tpu.matmul %19, %18, %cst_9 {dimension_numbers = #tpu.dot_dimension_numbers<[1], [0], [0], [1], [0, 0, 1, 1], [], []>} : vector<8x64xf32>, vector<64x128xf32>, vector<8x128xf32> -> vector<8x128xf32>
    %21 = vector.extract_strided_slice %20 {offsets = [0, 0], sizes = [1, 128], strides = [1, 1]} : vector<8x128xf32> to vector<1x128xf32>
    %22 = vector.broadcast %5 : vector<1x1xf32> to vector<1x128xf32>
    %23 = arith.addf %21, %22 : vector<1x128xf32>
    %c0_10 = arith.constant 0 : index
    %c0_11 = arith.constant 0 : index
    %24 = vector.load %arg5[%c0_10, %c0_11] : memref<1x128xf32, #tpu.memory_space<vmem>>, vector<1x128xf32>
    tpu.vector_store %arg5[%c0_10, %c0_11], %23 {strides = array<i32>} : memref<1x128xf32, #tpu.memory_space<vmem>>, vector<1x128xf32>,
    return
  }
  func.func @transform_0(%arg0: i32) -> (i32, i32) {
    %c0_i32 = arith.constant 0 : i32
    %c0_i32_0 = arith.constant 0 : i32
    return %c0_i32, %arg0 : i32, i32
  }
  func.func @transform_1(%arg0: i32) -> (i32, i32) {
    %c0_i32 = arith.constant 0 : i32
    %c0_i32_0 = arith.constant 0 : i32
    %c0_i32_1 = arith.constant 0 : i32
    return %c0_i32, %c0_i32_0 : i32, i32
  }
  func.func @transform_2(%arg0: i32) -> (i32, i32) {
    %c0_i32 = arith.constant 0 : i32
    %c0_i32_0 = arith.constant 0 : i32
    %c0_i32_1 = arith.constant 0 : i32
    return %c0_i32, %c0_i32_0 : i32, i32
  }
  func.func @transform_3(%arg0: i32) -> (i32, i32) {
    %c0_i32 = arith.constant 0 : i32
    %c0_i32_0 = arith.constant 0 : i32
    %c0_i32_1 = arith.constant 0 : i32
    return %c0_i32, %c0_i32_0 : i32, i32
  }
  func.func @transform_4(%arg0: i32) -> (i32, i32) {
    %c0_i32 = arith.constant 0 : i32
    %c0_i32_0 = arith.constant 0 : i32
    return %c0_i32, %arg0 : i32, i32
  }
}

</mosaic_0001>

<bundles_post_ra>
// kernel: tpu_custom_call.1
= control target key start
LH: loop header
LB: loop body
LE: loop exit
PB: predicated region body
PF: predicated region fallthrough
CT: control target
= control target key end

     0   :  { %9 = vsyncpa [#allocation3], 0  ;;  %s1062_s0 = inlined_call_operand.vmem [shape: f32[1,256], index: 0, kind: input, shape index: {}]   ;;  %s1063_s1 = inlined_call_operand.vmem [shape: f32[64,8], index: 1, kind: input, shape index: {}]   ;;  %s1064_s2 = inlined_call_operand.vmem [shape: f32[64,64], index: 2, kind: input, shape index: {}]   ;;  %s1065_s3 = inlined_call_operand.vmem [shape: f32[8,64], index: 3, kind: input, shape index: {}]   ;;  %s1066_s4 = inlined_call_operand.hbm [shape: f32[1,256], index: 4, kind: output, shape index: {}]  }
   0x1   :  { %11 = vsyncpa [#allocation3 + $0x1], 0  ;;  %s896_s15 = smov 0   ;;  %s898_s16 = smov 0  }
   0x2   :  { %s900_s17 = smov 0   ;;  %s902_s18 = smov 0  }
   0x3 LB: > { %s917_s19 = sadd.s32 4294967295, %s861_s18   ;;  %s623_s20 = sadd.s32 4294967294, %s861_s18   ;;  %s861_s18 = sphi %s902_s18, %s1072_s18   ;;  %s857_s17 = sphi %s900_s17, %s1071_s17   ;;  %s853_s16 = sphi %s898_s16, %s1070_s16   ;;  %s849_s15 = sphi %s896_s15, %s1069_s15  }
   0x4   : > { %s921_s21 = sadd.s32 1, %s861_s18   ;;  %s113_s22 = sadd.s32 1, %s857_s17 }
   0x5   : > { %s110_s23 = ssub.s32 %s861_s18, %s921_s21  ;;  %p123_p0 = scmp.ne.s32.totalorder %s857_s17, %s853_s16 }
   0x6   : > { %p111_p1 = scmp.eq.s32.totalorder %s110_s23, 0  ;;  %p124_p2 = scmp.eq.s32.totalorder %s917_s19, 1 }
   0x7   : > { %p129_p3 = scmp.ne.s32.totalorder %s853_s16, %s849_s15  ;;  %p130_p4 = scmp.eq.s32.totalorder %s623_s20, 1 }
   0x8   : > { %s932_s24 = scalar_select %p111_p1, %s857_s17, %s113_s22  }
   0x9   : > { %p934_p5 = por %p124_p2, %p123_p0  ;;  %p938_p6 = por %p130_p4, %p129_p3 }
   0xa   : > { %p626_p7 = scmp.ge.s32.totalorder %s861_s18, 1  ;;  %p163_p8 = scmp.lt.s32.totalorder %s861_s18, 3 }
   0xc   : > { %p164_p9 = pnand %p626_p7, %p163_p8 }
   0xd   : > { %v192_v0 = vld [vmem:[%s1063_s1 + $0x10] sm:$0xff] (!%p164_p9)  ;;  %v950_v1 = vld [vmem:[%s1063_s1] sm:$0xff] (!%p164_p9)  ;;  %v863_v2 = vmov (!%p164_p9), 1   ;;  %v191_v3 = vld [vmem:[%s1063_s1 + $0x8] sm:$0xff] (!%p164_p9)  ;;  %v864_v4 = vmov (!%p164_p9), 0   ;;  %vm340_vm0 = vcmask (!%p164_p9), 523264  }
   0xe   : > { %167 = sbr.rel (%p164_p9) target bundleno = 653 (0x28d), region = 36  ;;  %788 = vset.pattern.permute.xlu0 (!%p164_p9), %v863_v2  ;;  %786 = vset.pattern.permute.xlu1 (!%p164_p9), %v863_v2  ;;  %v193_v5 = vld [vmem:[%s1063_s1 + $0x18] sm:$0xff] (!%p164_p9)  ;;  %v195_v6 = vld [vmem:[%s1063_s1 + $0x28] sm:$0xff] (!%p164_p9)  ;;  %v194_v7 = vld [vmem:[%s1063_s1 + $0x20] sm:$0xff] (!%p164_p9)  ;;  %v865_v11 = vmov (!%p164_p9), 2   ;;  %p186_p10 = scmp.lt.s32.totalorder (!%p164_p9), %s917_s19, 1 }
   0xf   : > { %261 = vperm.xlu0 (!%p164_p9), %788, %v192_v0   ;;  %253 = vperm.xlu1 (!%p164_p9), %786, %v950_v1   ;;  %v196_v8 = vld [vmem:[%s1063_s1 + $0x30] sm:$0xff] (!%p164_p9)  ;;  %v197_v9 = vld [vmem:[%s1063_s1 + $0x38] sm:$0xff] (!%p164_p9)  ;;  %v300_v10 = vld [vmem:[%s1064_s2] sm:$0xff] (!%p164_p9)  ;;  %vm867_vm1 = vmmov (!%p164_p9), 0   ;;  %s637_s6 = sshll.u32 (!%p164_p9), %s917_s19, 4 }
  0x10   : > { %681 = vmatprep.mubr.msk.f32.mxu0 (!%p164_p9), %vm340_vm0, %v300_v10  ;;  %v301_v57 = vld [vmem:[%s1064_s2 + $0x8] sm:$0xff] (!%p164_p9)  ;;  %v302_v58 = vld [vmem:[%s1064_s2 + $0x10] sm:$0xff] (!%p164_p9)  ;;  %v303_v59 = vld [vmem:[%s1064_s2 + $0x18] sm:$0xff] (!%p164_p9)  ;;  %s1020_s11 = scalar_lea.hbm (!%p164_p9), %s1066_s4, %s637_s6 }
  0x11   : > { %v304_v60 = vld [vmem:[%s1064_s2 + $0x20] sm:$0xff] (!%p164_p9)  ;;  %v305_v61 = vld [vmem:[%s1064_s2 + $0x28] sm:$0xff] (!%p164_p9)  ;;  %v306_v62 = vld [vmem:[%s1064_s2 + $0x30] sm:$0xff] (!%p164_p9) }
  0x12   : > { %v307_v63 = vld [vmem:[%s1064_s2 + $0x38] sm:$0xff] (!%p164_p9) }
  0x13   : > { %789 = vset.pattern.permute.xlu0 (!%p164_p9), %v864_v4  ;;  %257 = vperm.xlu1 (!%p164_p9), %786, %v191_v3  }
  0x14   : > { %200 = vperm.xlu0 (!%p164_p9), %789, %v950_v1  }
  0x15   : > { %s187_s28 = scalar_select %p186_p10, %s917_s19, 1 }
  0x16   : > { %s870_s19 = smov [#allocation2]  }
  0x17   : > { %787 = vset.pattern.permute.xlu1 %v864_v4  ;;  %s188_s5 = scalar_lea.vmem %s1062_s0, %s187_s28  ;;  %s803_s14 = sshll.u32 %s870_s19, 4  ;;  %s804_s14 = int_to_ptr.vmem [resolvable:$false] %s803_s14 }
  0x18   : > { %205 = vperm.xlu0 %789, %v191_v3   ;;  %215 = vperm.xlu1 %787, %v193_v5   ;;  %v627_v14 = vld [vmem:[%s188_s5] ss:$0 sm:$0xff]  ;;  %s184_s5 = sand.u32 1, %s853_s16   ;;  %s805_s20 = scalar_lea.vmem %s804_s14, 32 }
  0x19   : > { %s185_s7 = scalar_lea.vmem [#allocation2], %s184_s5  ;;  %s559_s12 = scalar_lea.sflag [#allocation3], %s184_s5 }
  0x1a   : > { %s571_s8 = sshll.u32 %s185_s7, 4  ;;  %s1022_s8 = int_to_ptr.vmem [resolvable:$true] %s571_s8 }
  0x1b   : > { %s799_s13 = scalar_lea.vmem %s1022_s8, 16  ;;  %p806_p0 = scmp.lt.s32.totalorder %s1022_s8, %s804_s14 }
  0x1c   : > { %210 = vperm.xlu0 %789, %v192_v0   ;;  %790 = vset.pattern.permute.xlu1 %v863_v2  ;;  %p800_p11 = scmp.ne.s32.totalorder %s1022_s8, %s799_s13  ;;  %p807_p1 = scmp.lt.s32.totalorder %s805_s20, %s799_s13 }
  0x1d   : > { %265 = vperm.xlu1 %790, %v193_v5  }
  0x1e   : > { %p801_p12 = pnand %p800_p11, %p934_p5  ;;  %p808_p2 = por %p807_p1, %p806_p0 }
  0x20   : > { %225 = vperm.xlu0 %789, %v195_v6   ;;  %p802_p13 = pneg %p801_p12 }
  0x21   : > { %791 = vset.pattern.permute.xlu1 %v864_v4 }
  0x22   : > { %220 = vperm.xlu1 %791, %v194_v7   ;;  %p809_p3 = pnand %p808_p2, %p802_p13 }
  0x24   : > { %230 = vperm.xlu0 %789, %v196_v8  }
  0x26   : > { %792 = vset.pattern.permute.xlu1 %v863_v2 }
  0x27   : > { %269 = vperm.xlu1 %792, %v194_v7  }
  0x28   : > { %794 = vset.pattern.permute.xlu0 %v863_v2 }
  0x29   : > { %277 = vperm.xlu0 %794, %v196_v8  }
  0x2b   : > { %273 = vperm.xlu1 %792, %v195_v6  }
  0x2d   : > { %797 = vset.pattern.permute.xlu0 %v865_v11 }
  0x2e   : > { %313 = vperm.xlu0 %797, %v191_v3   ;;  %v869_v3 = vmov 3  }
  0x2f   : > { %793 = vset.pattern.permute.xlu1 %v864_v4 }
  0x30   : > { %235 = vperm.xlu1 %793, %v197_v9  }
  0x32   : > { %325 = vperm.xlu0 %797, %v194_v7  }
  0x34   : > { %795 = vset.pattern.permute.xlu1 %v863_v2  ;;  %v868_v2 = vmov 0.0  }
  0x35   : > { %281 = vperm.xlu1 %795, %v197_v9   ;;  %709 = vmatprep.mubr.msk.f32.mxu1 %vm867_vm1, %v868_v2 }
  0x36   : > { %333 = vperm.xlu0 %797, %v196_v8  }
  0x39   : > { %796 = vset.pattern.permute.xlu1 %v865_v11 }
  0x3a   : > { %309 = vperm.xlu1 %796, %v950_v1   ;;  %798 = vset.pattern.permute.xlu0 %v869_v3 }
  0x3b   : > { %553 = vperm.xlu0 %798, %v950_v1  }
  0x3e   : > { %317 = vperm.xlu1 %796, %v192_v0   ;;  %v866_v0 = vmov 0.0|0.0  }
  0x3f   : > { %728 = vmatprep.subr.bf16.mxu1 %v866_v0 }
  0x42   : > { %321 = vperm.xlu1 %796, %v193_v5  }
  0x46   : > { %329 = vperm.xlu1 %796, %v195_v6  }
  0x4a   : > { %337 = vperm.xlu1 %796, %v197_v9  }
  0x8e   : > { %v254_v12 = vpop.permute.xlu1 %253  ;;  %v262_v13 = vpop.permute.xlu0 %261 }
  0x92   : > { %v258_v15 = vpop.permute.xlu1 %257 }
  0x93   : > { %v201_v16 = vpop.permute.xlu0 %200 }
  0x94   : > { %v244_v17 = vmul.f32 %v627_v14, %v201_v16 }
  0x96   : > { %v284_v20 = vadd.f32 %v254_v12, %v244_v17 }
  0x97   : > { %v206_v18 = vpop.permute.xlu0 %205  ;;  %v216_v19 = vpop.permute.xlu1 %215 }
  0x98   : > { %v245_v21 = vmul.f32 %v627_v14, %v206_v18  ;;  %v247_v23 = vmul.f32 %v627_v14, %v216_v19  ;;  %v292_v25 = vmax.f32 %v284_v20, 0.0 }
  0x9a   : > { %v285_v22 = vadd.f32 %v258_v15, %v245_v21 }
  0x9b   : > { %v211_v24 = vpop.permute.xlu0 %210 }
  0x9c   : > { %v293_v26 = vmax.f32 %v285_v22, 0.0  ;;  %v246_v27 = vmul.f32 %v627_v14, %v211_v24  ;;  %v266_v28 = vpop.permute.xlu1 %265 }
  0x9d   : > { %v287_v29 = vadd.f32 %v266_v28, %v247_v23 }
  0x9e   : > { %v286_v30 = vadd.f32 %v262_v13, %v246_v27  ;;  %v712_v31 = vpack.c.bf16 %v293_v26, %v292_v25 }
  0x9f   : > { %v295_v32 = vmax.f32 %v287_v29, 0.0  ;;  %v226_v36 = vpop.permute.xlu0 %225 }
  0xa0   : > { %v294_v33 = vmax.f32 %v286_v30, 0.0  ;;  %713 = vmatprep.subr.bf16.mxu0 %v712_v31  ;;  %v249_v39 = vmul.f32 %v627_v14, %v226_v36 }
  0xa1   : > { %v221_v34 = vpop.permute.xlu1 %220  ;;  %715 = vmatpush3.bf16.msra.mxu0 %v712_v31 }
  0xa2   : > { %v716_v35 = vpack.c.bf16 %v295_v32, %v294_v33  ;;  %v248_v38 = vmul.f32 %v627_v14, %v221_v34 }
  0xa3   : > { %v231_v41 = vpop.permute.xlu0 %230 }
  0xa4   : > { %717 = vmatprep.subr.bf16.mxu0 %v716_v35  ;;  %v250_v49 = vmul.f32 %v627_v14, %v231_v41 }
  0xa5   : > { %719 = vmatpush3.bf16.msra.mxu0 %v716_v35 }
  0xa6   : > { %v270_v37 = vpop.permute.xlu1 %269 }
  0xa7   : > { %v288_v40 = vadd.f32 %v270_v37, %v248_v38 }
  0xa8   : > { %v278_v48 = vpop.permute.xlu0 %277 }
  0xa9   : > { %v296_v44 = vmax.f32 %v288_v40, 0.0  ;;  %v290_v50 = vadd.f32 %v278_v48, %v250_v49 }
  0xaa   : > { %v274_v42 = vpop.permute.xlu1 %273 }
  0xab   : > { %v289_v43 = vadd.f32 %v274_v42, %v249_v39  ;;  %v298_v54 = vmax.f32 %v290_v50, 0.0  ;;  %v478_v39 = vld [vmem:[%s1065_s3] sm:$0xff] }
  0xad   : > { %v297_v45 = vmax.f32 %v289_v43, 0.0  ;;  %v314_v6 = vpop.permute.xlu0 %313 }
  0xaf   : > { %v720_v46 = vpack.c.bf16 %v297_v45, %v296_v44  ;;  %v236_v47 = vpop.permute.xlu1 %235 }
  0xb0   : > { %v251_v51 = vmul.f32 %v627_v14, %v236_v47 }
  0xb1   : > { %721 = vmatprep.subr.bf16.mxu0 %v720_v46  ;;  %v326_v20 = vpop.permute.xlu0 %325 }
  0xb2   : > { %723 = vmatpush3.bf16.msra.mxu0 %v720_v46 }
  0xb4   : > { %v282_v52 = vpop.permute.xlu1 %281 }
  0xb5   : > { %v291_v53 = vadd.f32 %v282_v52, %v251_v51  ;;  %v334_v31 = vpop.permute.xlu0 %333 }
  0xb7   : > { %v299_v55 = vmax.f32 %v291_v53, 0.0 }
  0xb9   : > { %v724_v56 = vpack.c.bf16 %v299_v55, %v298_v54  ;;  %v310_v4 = vpop.permute.xlu1 %309 }
  0xba   : > { %v554_v40 = vpop.permute.xlu0 %553 }
  0xbb   : > { %725 = vmatprep.subr.bf16.mxu0 %v724_v56 }
  0xbc   : > { %727 = vmatpush3.bf16.msra.mxu0 %v724_v56 }
  0xbd   : > { %v318_v5 = vpop.permute.xlu1 %317 }
  0xbf   : > { %682 = vmatmul.mubr.msk.f32.vlgmr.msra.gmra.mrb[0].mxu0 %vm340_vm0, %v301_v57 }
  0xc0   : > { %684 = vmatprep.mubr.msk.f32.mxu0 %vm340_vm0, %v302_v58 }
  0xc1   : > { %v322_v7 = vpop.permute.xlu1 %321 }
  0xc3   : > { %685 = vmatmul.mubr.msk.f32.gmra.mrb[2].mxu0 %vm340_vm0, %v303_v59 }
  0xc4   : > { %687 = vmatprep.mubr.msk.f32.mxu0 %vm340_vm0, %v304_v60 }
  0xc5   : > { %v330_v17 = vpop.permute.xlu1 %329 }
  0xc7   : > { %688 = vmatmul.mubr.msk.f32.gmra.mrb[4].mxu0 %vm340_vm0, %v305_v61 }
  0xc8   : > { %690 = vmatprep.mubr.msk.f32.mxu0 %vm340_vm0, %v306_v62 }
  0xc9   : > { %v338_v28 = vpop.permute.xlu1 %337 }
  0xcb   : > { %691 = vmatmul.mubr.msk.f32.gmra.mrb[6].mxu0 %vm340_vm0, %v307_v63 }
 0x192   : > { %v683_v8 = vpop.f32.mrb[0].mxu0 }
 0x193   : > { %v437_v9 = vadd.f32 %v683_v8, %v314_v6  ;;  %v431_v10 = vpop.f32.mrb[1].mxu0 }
 0x194   : > { %v432_v11 = vadd.f32 %v431_v10, %v310_v4 }
 0x195   : > { %v471_v12 = vmax.f32 %v437_v9, 0.0 }
 0x196   : > { %v470_v13 = vmax.f32 %v432_v11, 0.0  ;;  %v686_v14 = vpop.f32.mrb[2].mxu0 }
 0x197   : > { %v447_v15 = vadd.f32 %v686_v14, %v322_v7  ;;  %v441_v16 = vpop.f32.mrb[3].mxu0 }
 0x198   : > { %v442_v18 = vadd.f32 %v441_v16, %v318_v5  ;;  %v729_v19 = vpack.c.bf16 %v471_v12, %v470_v13 }
 0x199   : > { %v473_v21 = vmax.f32 %v447_v15, 0.0 }
 0x19a   : > { %v472_v22 = vmax.f32 %v442_v18, 0.0  ;;  %v689_v1 = vpop.f32.mrb[4].mxu0  ;;  %730 = vmatpush3.bf16.msra.mxu1 %v729_v19 }
 0x19b   : > { %v457_v23 = vadd.f32 %v689_v1, %v330_v17  ;;  %v451_v24 = vpop.f32.mrb[5].mxu0  ;;  %731 = vmatprep.subr.bf16.mxu1 %v866_v0 }
 0x19c   : > { %v732_v25 = vpack.c.bf16 %v473_v21, %v472_v22  ;;  %v452_v26 = vadd.f32 %v451_v24, %v326_v20 }
 0x19d   : > { %v475_v27 = vmax.f32 %v457_v23, 0.0 }
 0x19e   : > { %v474_v29 = vmax.f32 %v452_v26, 0.0  ;;  %v692_v30 = vpop.f32.mrb[6].mxu0  ;;  %733 = vmatpush3.bf16.msra.mxu1 %v732_v25 }
 0x19f   : > { %v467_v32 = vadd.f32 %v692_v30, %v338_v28  ;;  %v461_v33 = vpop.f32.mrb[7].mxu0  ;;  %734 = vmatprep.subr.bf16.mxu1 %v866_v0 }
 0x1a0   : > { %v735_v34 = vpack.c.bf16 %v475_v27, %v474_v29  ;;  %v462_v35 = vadd.f32 %v461_v33, %v334_v31 }
 0x1a1   : > { %v477_v36 = vmax.f32 %v467_v32, 0.0 }
 0x1a2   : > { %v476_v37 = vmax.f32 %v462_v35, 0.0  ;;  %736 = vmatpush3.bf16.msra.mxu1 %v735_v34 }
 0x1a3   : > { %737 = vmatprep.subr.bf16.mxu1 %v866_v0 }
 0x1a4   : > { %v738_v38 = vpack.c.bf16 %v477_v36, %v476_v37 }
 0x1a6   : > { %739 = vmatpush3.bf16.msra.mxu1 %v738_v38 }
 0x1a9   : > { %710 = vmatmul.mubr.msk.f32.vlgmr.msra.gmra.mrb[0].mxu1 %vm340_vm0, %v478_v39 }
 0x27c   : > { %v548_v41 = vpop.f32.mrb[0].mxu1 }
 0x27d   : > { %v556_v42 = vadd.f32 %v554_v40, %v548_v41  ;;  %v711_v43 = vpop.f32.mrb[1].mxu1 }
 0x27f   : > { %557 = vst [vmem:[%s185_s7] sm:$0x1] %v556_v42 }
 0x280   : > { %812 = shalt.err (!%p809_p3)
}
 0x281   : > { %s813_s22 = scalar_lea.hbm %s1020_s11, 16  ;;  %s817_s28 = scalar_lea.hbm %s1066_s4, 32 }
 0x282   : > { %p814_p4 = scmp.ne.s32.totalorder %s1020_s11, %s813_s22  ;;  %p818_p9 = scmp.lt.u32.totalorder %s1020_s11, %s1066_s4 }
 0x283   : > { %p819_p10 = scmp.lt.u32.totalorder %s817_s28, %s813_s22  ;;  %p821_p12 = scmp.lt.u32.totalorder %s813_s22, %s1020_s11 }
 0x284   : > { %p815_p7 = pnand %p814_p4, %p934_p5 }
 0x285   : > { %p820_p11 = por %p819_p10, %p818_p9 }
 0x286   : > { %p816_p8 = pneg %p815_p7 }
 0x287   : > { %p822_p13 = por %p821_p12, %p820_p11 }
 0x289   : > { %p823_p0 = pnand %p822_p13, %p816_p8 }
 0x28b   : > { %826 = shalt.err (!%p823_p0)
}
 0x28c   : > { %740 = dma.vmem_to_hbm [thread:$0]  (%p934_p5), %s1022_s8, 16, %s1020_s11, %s559_s12  }
 0x28d PF: > { %p746_p1 = scmp.ge.s32.totalorder %s861_s18, 2  ;;  %s583_s5 = sand.u32 1, %s849_s15  }
 0x28e   : > { %s584_s6 = scalar_lea.sflag [#allocation3], %s583_s5 }
 0x28f   : > { %p743_p2 = pnand %p746_p1, %p938_p6 }
 0x291   : > { %844 = dma.done.wait (!%p743_p2), %s584_s6, 16  }
 0x292   : > { %846 = vsyncadd (!%p743_p2), %s584_s6, 4294967280  ;;  %p14_p3 = scmp.ge.s32.totalorder %s921_s21, 4   ;;  %s1069_s15 = smov %s853_s16 }
 0x293   : > { %s1070_s16 = smov %s857_s17  ;;  %s1071_s17 = smov %s932_s24 }
 0x294   : > { %s1072_s18 = smov %s921_s21  ;;  %16 = sbr.rel (!%p14_p3) target bundleno = 3 (0x3), region = 71 }
 0x29b   :  { %588 = vsyncpa [#allocation3], 1 }
 0x29c   :  { %590 = vsyncpa [#allocation3 + $0x1], 1 }

</bundles_post_ra>
